<compile_context>
chip_gen: v6e
topology: v6e:2x2x1
jax: 0.10.0
libtpu: 0.0.40
codegen_flags: <defaults>
</compile_context>

<pallas_src>
import functools

import jax
import jax.numpy as jnp
from jax.experimental import pallas as pl
from jax.experimental.pallas import tpu as pltpu


def _round_up(x: int, m: int) -> int:
    return ((x + m - 1) // m) * m


def _default_vmem_budget() -> int:
    # ~60% of physical VMEM, clamped to [32 MiB, 96 MiB]:
    #   v7x (64 MiB phys)  -> ~38 MiB requested (headroom for compiler scratch)
    #   v5e/v6e (128 MiB)  -> ~76 MiB requested
    try:
        cap = int(pltpu.get_tpu_info().vmem_capacity_bytes)
    except Exception:
        cap = 64 * 1024 * 1024
    return max(32 * 1024 * 1024, min(96 * 1024 * 1024, (cap * 3) // 5))


def _logitnorm_kernel(x_ref, labels_ref, out_ref, *, t: float, n_rows: int,
                      tile_n: int, ragged: bool):
    # x_ref: (tile_n, C) logits in native dtype, labels_ref: (tile_n, 1) int32,
    # out_ref: (1, 8, 128) f32 -- per-tile partial sum, broadcast across the block.
    x = x_ref[...].astype(jnp.float32)          # (tile_n, C), f32 in-register
    labels = labels_ref[...]                    # (tile_n, 1) int32

    inv_t = jnp.float32(1.0 / t)

    # L2 norm along the class (lane) dim, +1e-7 exactly as in the PyTorch module.
    norms = jnp.sqrt(jnp.sum(x * x, axis=-1, keepdims=True)) + 1e-7    # (tile_n, 1)
    # Fold 1/t into one per-row scale -> a single (tile_n, C) multiply on the VPU.
    inv = inv_t / norms                                                # (tile_n, 1)
    z = x * inv                                                        # |z_c| <= 1/t

    # Target logit first so the iota / mask temporaries die before exp(z) lives.
    col_ids = jax.lax.broadcasted_iota(jnp.int32, z.shape, 1)          # (tile_n, C)
    target_logit = jnp.sum(
        jnp.where(col_ids == labels, z, 0.0), axis=-1, keepdims=True)  # (tile_n, 1)

    # Shifted logsumexp: z - 1/t <= 0, so exp cannot overflow for any temperature,
    # without a per-row max reduction.
    # TODO(synk): for t <~ 0.01 with many near-uniform classes the shifted sum can flush to
    # zero on TPU (subnormal flush); switch to per-row max subtraction if that regime matters.
    lse = inv_t + jnp.log(jnp.sum(jnp.exp(z - inv_t), axis=-1, keepdims=True))

    per_row = lse - target_logit                                       # (tile_n, 1)

    if ragged:
        # Only emitted when N % tile_n != 0: mask the garbage rows of the partial last
        # block (garbage is row-local; jnp.where does not propagate NaN/inf from the
        # unselected branch in the forward pass).
        i = pl.program_id(0)
        row_ids = i * tile_n + jax.lax.broadcasted_iota(jnp.int32, (tile_n, 1), 0)
        per_row = jnp.where(row_ids < n_rows, per_row, 0.0)

    tile_sum = jnp.sum(per_row, keepdims=True)                         # (1, 1)
    out_ref[...] = jnp.broadcast_to(tile_sum.reshape(1, 1, 1), (1, 8, 128))


def logitnorm_loss(x: jax.Array, labels: jax.Array, t: float = 1.0,
                   tile_n: int | None = None,
                   vmem_limit_bytes: int | None = None,
                   target_block_bytes: int = 2 * 1024 * 1024) -> jax.Array:
    """LogitNorm forward: mean cross-entropy of L2-normalized, temperature-scaled logits.

    x: (N, C) float array (f32 or bf16 -- pass bf16 directly to halve HBM traffic),
    labels: (N,) integer array. Returns a scalar float32 loss.
    """
    n, c = x.shape
    if vmem_limit_bytes is None:
        vmem_limit_bytes = _default_vmem_budget()

    c_pad = _round_up(c, 128)
    x_itemsize = jnp.dtype(x.dtype).itemsize

    # Lane/sublane-padding-aware VMEM footprint per tile row:
    #   2x double-buffered x block (lane-padded to 128)
    # + 2x double-buffered labels column ((tile_n,1) int32 lane-pads to 128 -> 512 B/row/buf)
    # + ~4 full-width f32/i32 live temporaries inside the kernel (z, exp, iota/mask, cast).
    # TODO(synk): lane-major labels ((1, tile_n) blocks) and class-dim chunking would shrink
    # this further for very small / very large C respectively.
    bytes_per_row = 2 * c_pad * x_itemsize + 2 * 128 * 4 + 4 * c_pad * 4
    max_rows = max(8, int(vmem_limit_bytes * 0.85) // bytes_per_row)

    if tile_n is None:
        # Size the row tile by bytes: ~target_block_bytes per input block so DMAs are large
        # enough to sit near the HBM roofline regardless of C.
        tile_n = max(8, target_block_bytes // (c_pad * x_itemsize))
    tile_n = int(min(tile_n, max_rows, _round_up(n, 8)))
    tile_n = max(8, (tile_n // 8) * 8)

    num_tiles = (n + tile_n - 1) // tile_n
    ragged = (n % tile_n) != 0

    labels2d = labels.astype(jnp.int32).reshape(n, 1)

    partial = pl.pallas_call(
        functools.partial(_logitnorm_kernel, t=float(t), n_rows=n,
                          tile_n=tile_n, ragged=ragged),
        out_shape=jax.ShapeDtypeStruct((num_tiles, 8, 128), jnp.float32),
        grid_spec=pltpu.PrefetchScalarGridSpec(
            num_scalar_prefetch=0,
            grid=(num_tiles,),
            in_specs=[
                pl.BlockSpec((tile_n, c), lambda i: (i, 0)),
                pl.BlockSpec((tile_n, 1), lambda i: (i, 0)),
            ],
            # Per-tile partial sums: 1:1 block<->grid mapping, no revisiting, so the grid
            # axis can be safely sharded across TensorCores ("parallel" -> v7x megacore).
            out_specs=pl.BlockSpec((1, 8, 128), lambda i: (i, 0, 0)),
        ),
        compiler_params=pltpu.CompilerParams(
            dimension_semantics=("parallel",),
            vmem_limit_bytes=int(vmem_limit_bytes),
        ),
    )(x, labels2d)

    return jnp.sum(partial[:, 0, 0]) / jnp.float32(n)


def _reference_loss(x, labels, t=1.0):
    norms = jnp.linalg.norm(x.astype(jnp.float32), axis=-1, keepdims=True) + 1e-7
    z = (x.astype(jnp.float32) / norms) / t
    logp = jax.nn.log_softmax(z, axis=-1)
    return -jnp.mean(logp[jnp.arange(x.shape[0]), labels])


if __name__ == "__main__":
    key = jax.random.PRNGKey(0)
    kx, kl, kx2, kl2, kx3, kl3 = jax.random.split(key, 6)

    # Shapes consistent with the module docstring: x (16, 10), labels (16,)
    N, C = 16, 10
    x = jax.random.normal(kx, (N, C), dtype=jnp.float32)
    labels = jax.random.randint(kl, (N,), 0, C, dtype=jnp.int32)
    loss = logitnorm_loss(x, labels, t=1.0)
    jax.block_until_ready(loss)
    ref = _reference_loss(x, labels, t=1.0)
    assert jnp.allclose(loss, ref, atol=1e-5, rtol=1e-5), (loss, ref)

    # Ragged batch + forced multi-tile grid (exercises per-tile partial sums, the parallel
    # grid and padded-row masking without any wrapper-side padding of x), non-default t.
    N2, C2 = 19, 10
    x2 = jax.random.normal(kx2, (N2, C2), dtype=jnp.float32)
    labels2 = jax.random.randint(kl2, (N2,), 0, C2, dtype=jnp.int32)
    loss2 = logitnorm_loss(x2, labels2, t=0.7, tile_n=8)
    jax.block_until_ready(loss2)
    ref2 = _reference_loss(x2, labels2, t=0.7)
    assert jnp.allclose(loss2, ref2, atol=1e-5, rtol=1e-5), (loss2, ref2)

    # Tiny temperature (t=0.01): the previous max-free logsumexp overflowed here; the
    # shifted form (z - 1/t) stays finite.
    N3, C3 = 32, 10
    x3 = jax.random.normal(kx3, (N3, C3), dtype=jnp.float32)
    labels3 = jax.random.randint(kl3, (N3,), 0, C3, dtype=jnp.int32)
    loss3 = logitnorm_loss(x3, labels3, t=0.01)
    jax.block_until_ready(loss3)
    ref3 = _reference_loss(x3, labels3, t=0.01)
    assert jnp.isfinite(loss3), loss3
    assert jnp.allclose(loss3, ref3, atol=1e-4, rtol=1e-4), (loss3, ref3)

    print("KERNEL_OK")
</pallas_src>

<mosaic_0001>
module attributes {stable_mosaic.version = 11 : i64} {
  func.func @_logitnorm_kernel(%arg0: i32, %arg1: memref<16x10xf32, #tpu.memory_space<vmem>>, %arg2: memref<16x1xi32, #tpu.memory_space<vmem>>, %arg3: memref<1x8x128xf32, #tpu.memory_space<vmem>>) attributes {dimension_semantics = [#tpu.dimension_semantics<parallel>], iteration_bounds = array<i64: 1>, scalar_prefetch = 0 : i64, scratch_operands = 0 : i64, tpu.core_type = #tpu.core_type<tc>, window_params = [{transform_indices = @transform_0, window_bounds = array<i64: 16, 10>}, {transform_indices = @transform_1, window_bounds = array<i64: 16, 1>}, {transform_indices = @transform_2, window_bounds = array<i64: 1, 8, 128>}]} {
    %c0 = arith.constant 0 : index
    %c0_0 = arith.constant 0 : index
    %0 = vector.load %arg1[%c0, %c0_0] : memref<16x10xf32, #tpu.memory_space<vmem>>, vector<16x10xf32>
    %c0_1 = arith.constant 0 : index
    %c0_2 = arith.constant 0 : index
    %1 = vector.load %arg2[%c0_1, %c0_2] : memref<16x1xi32, #tpu.memory_space<vmem>>, vector<16x1xi32>
    %2 = arith.mulf %0, %0 : vector<16x10xf32>
    %cst = arith.constant dense<0.000000e+00> : vector<16xf32>
    %3 = vector.multi_reduction <add>, %2, %cst [1] : vector<16x10xf32> to vector<16xf32>
    %4 = vector.shape_cast %3 : vector<16xf32> to vector<16x1xf32>
    %5 = math.sqrt %4 : vector<16x1xf32>
    %cst_3 = arith.constant 1.000000e-07 : f32
    %6 = vector.broadcast %cst_3 : f32 to vector<16x1xf32>
    %7 = arith.addf %5, %6 : vector<16x1xf32>
    %cst_4 = arith.constant 1.000000e+00 : f32
    %8 = vector.broadcast %cst_4 : f32 to vector<16x1xf32>
    %9 = arith.divf %8, %7 : vector<16x1xf32>
    %10 = vector.broadcast %9 : vector<16x1xf32> to vector<16x10xf32>
    %11 = arith.mulf %0, %10 : vector<16x10xf32>
    %12 = tpu.iota {dimensions = array<i32: 1>} : vector<16x10xi32>
    %13 = vector.broadcast %1 : vector<16x1xi32> to vector<16x10xi32>
    %14 = arith.cmpi eq, %12, %13 : vector<16x10xi32>
    %cst_5 = arith.constant 0.000000e+00 : f32
    %15 = vector.broadcast %cst_5 : f32 to vector<16x10xf32>
    %16 = arith.select %14, %11, %15 : vector<16x10xi1>, vector<16x10xf32>
    %cst_6 = arith.constant dense<0.000000e+00> : vector<16xf32>
    %17 = vector.multi_reduction <add>, %16, %cst_6 [1] : vector<16x10xf32> to vector<16xf32>
    %18 = vector.shape_cast %17 : vector<16xf32> to vector<16x1xf32>
    %cst_7 = arith.constant 1.000000e+00 : f32
    %19 = vector.broadcast %cst_7 : f32 to vector<16x10xf32>
    %20 = arith.subf %11, %19 : vector<16x10xf32>
    %21 = math.exp %20 : vector<16x10xf32>
    %cst_8 = arith.constant dense<0.000000e+00> : vector<16xf32>
    %22 = vector.multi_reduction <add>, %21, %cst_8 [1] : vector<16x10xf32> to vector<16xf32>
    %23 = vector.shape_cast %22 : vector<16xf32> to vector<16x1xf32>
    %24 = math.log %23 : vector<16x1xf32>
    %cst_9 = arith.constant 1.000000e+00 : f32
    %25 = vector.broadcast %cst_9 : f32 to vector<16x1xf32>
    %26 = arith.addf %25, %24 : vector<16x1xf32>
    %27 = arith.subf %26, %18 : vector<16x1xf32>
    %28 = vector.shape_cast %27 : vector<16x1xf32> to vector<1x16x1xf32>
    %cst_10 = arith.constant dense<0.000000e+00> : vector<1xf32>
    %29 = vector.multi_reduction <add>, %28, %cst_10 [1, 2] : vector<1x16x1xf32> to vector<1xf32>
    %30 = vector.shape_cast %29 : vector<1xf32> to vector<1x1x1xf32>
    %31 = vector.extract %30[0, 0, 0] : f32 from vector<1x1x1xf32>
    %32 = vector.broadcast %31 : f32 to vector<1x1xf32>
    %33 = vector.shape_cast %32 : vector<1x1xf32> to vector<1x1x1xf32>
    %34 = vector.shape_cast %33 : vector<1x1x1xf32> to vector<1x1x1xf32>
    %35 = vector.broadcast %34 : vector<1x1x1xf32> to vector<1x8x128xf32>
    %c0_11 = arith.constant 0 : index
    %c0_12 = arith.constant 0 : index
    %c0_13 = arith.constant 0 : index
    %36 = vector.load %arg3[%c0_11, %c0_12, %c0_13] : memref<1x8x128xf32, #tpu.memory_space<vmem>>, vector<1x8x128xf32>
    tpu.vector_store %arg3[%c0_11, %c0_12, %c0_13], %35 {strides = array<i32>} : memref<1x8x128xf32, #tpu.memory_space<vmem>>, vector<1x8x128xf32>,
    return
  }
  func.func @transform_0(%arg0: i32) -> (i32, i32) {
    %c0_i32 = arith.constant 0 : i32
    %c0_i32_0 = arith.constant 0 : i32
    return %arg0, %c0_i32 : i32, i32
  }
  func.func @transform_1(%arg0: i32) -> (i32, i32) {
    %c0_i32 = arith.constant 0 : i32
    %c0_i32_0 = arith.constant 0 : i32
    return %arg0, %c0_i32 : i32, i32
  }
  func.func @transform_2(%arg0: i32) -> (i32, i32, i32) {
    %c0_i32 = arith.constant 0 : i32
    %c0_i32_0 = arith.constant 0 : i32
    %c0_i32_1 = arith.constant 0 : i32
    return %arg0, %c0_i32, %c0_i32_0 : i32, i32, i32
  }
}

</mosaic_0001>

<bundles_post_ra>
// kernel: tpu_custom_call.1
= control target key start
LH: loop header
LB: loop body
LE: loop exit
PB: predicated region body
PF: predicated region fallthrough
CT: control target
= control target key end

     0   :  { %vm18_vm0 = vcmask 80896   ;;  %v160_v5 = vmov 0   ;;  %s198_s0 = inlined_call_operand.vmem [shape: f32[16,10], index: 0, kind: input, shape index: {}]   ;;  %s199_s1 = inlined_call_operand.vmem [shape: s32[16,1], index: 1, kind: input, shape index: {}]   ;;  %s200_s2 = inlined_call_operand.hbm [shape: f32[1,8,128], index: 2, kind: output, shape index: {}]  }
   0x1   :  { %v12_v0 = vld [vmem:[%s198_s0] sm:$0xff]  ;;  %v13_v1 = vld [vmem:[%s198_s0 + $0x8] sm:$0xff]  ;;  %120 = vset.pattern.permute.xlu1 %v160_v5  ;;  %121 = vset.pattern.permute.xlu0 %v160_v5 }
   0x2   :  { %v14_v2 = vld [vmem:[%s199_s1] sm:$0xff]  ;;  %v16_v3 = vmul.f32 %v12_v0, %v12_v0  ;;  %v17_v4 = vmul.f32 %v13_v1, %v13_v1 }
   0x3   :  { %7 = vsyncpa [#allocation3], 0  ;;  %50 = vperm.xlu1 %120, %v14_v2   ;;  %v15_v7 = vld [vmem:[%s199_s1 + $0x8] sm:$0xff]  ;;  %v47_v31 = vlaneseq  ;;  %vm85_vm7 = vcmask 7168   ;;  %s161_s0 = smov [#allocation2]  }
   0x4   :  { %v19_v6 = vsel %vm18_vm0, %v16_v3, 0.0  ;;  %v22_v8 = vsel %vm18_vm0, %v17_v4, 0.0  ;;  %s106_s1 = sshll.u32 %s161_s0, 4  ;;  %s107_s1 = int_to_ptr.vmem [resolvable:$true] %s106_s1 }
   0x5   :  { %20 = vadd.xlane.f32.xlu0 %v19_v6  ;;  %v48_v33 = vand.u32 127, %v47_v31  ;;  %s138_s18 = scalar_lea.vmem %s107_s1, 128  ;;  %p143_p1 = scmp.lt.s32.totalorder %s107_s1, %s107_s1 }
   0x6   :  { %p139_p0 = scmp.ne.s32.totalorder %s107_s1, %s138_s18  ;;  %p144_p2 = scmp.lt.s32.totalorder %s138_s18, %s138_s18 }
   0x7   :  { %53 = vperm.xlu1 %120, %v15_v7  }
   0x8   :  { %p145_p3 = por %p144_p2, %p143_p1 }
   0x9   :  { %23 = vadd.xlane.f32.xlu0 %v22_v8 }
   0xa   :  { %p146_p4 = pnand %p145_p3, %p139_p0 }
  0x7e   :  { %v51_v32 = vpop.permute.xlu1 %50 }
  0x7f   :  { %vm55_vm5 = vcmp.eq.s32.totalorder %v48_v33, %v51_v32 }
  0x82   :  { %v54_v35 = vpop.permute.xlu1 %53 }
  0x83   :  { %vm56_vm6 = vcmp.eq.s32.totalorder %v48_v33, %v54_v35 }
  0x8e   :  { %v21_v9 = vpop.xlane.xlu0 %20 }
  0x8f   :  { %122 = vrsqrt.f32 %v21_v9  ;;  %vm27_vm1 = vcmp.eq.f32.partialorder %v21_v9, inf  ;;  %v30_v13 = vand.u32 2147483648, %v21_v9  ;;  %vm29_vm2 = vcmp.eq.f32.partialorder %v21_v9, 0.0 }
  0x92   :  { %v24_v10 = vpop.xlane.xlu0 %23 }
  0x93   :  { %124 = vrsqrt.f32 %v24_v10  ;;  %vm34_vm3 = vcmp.eq.f32.partialorder %v24_v10, inf  ;;  %v37_v19 = vand.u32 2147483648, %v24_v10  ;;  %vm36_vm4 = vcmp.eq.f32.partialorder %v24_v10, 0.0 }
  0x9c   :  { %v123_v11 = vpop.eup %122 }
  0x9d   :  { %v26_v12 = vmul.f32 %v123_v11, %v21_v9 }
  0x9f   :  { %v28_v14 = vsel %vm27_vm1, %v21_v9, %v26_v12 }
  0xa0   :  { %v125_v15 = vpop.eup %124  ;;  %v31_v16 = vsel %vm29_vm2, %v30_v13, %v28_v14 }
  0xa1   :  { %v39_v17 = vadd.f32 1e-07, %v31_v16  ;;  %v33_v18 = vmul.f32 %v125_v15, %v24_v10 }
  0xa3   :  { %126 = vrcp.f32 %v39_v17  ;;  %v35_v20 = vsel %vm34_vm3, %v24_v10, %v33_v18 }
  0xa4   :  { %v38_v21 = vsel %vm36_vm4, %v37_v19, %v35_v20 }
  0xa5   :  { %v40_v22 = vadd.f32 1e-07, %v38_v21 }
  0xa7   :  { %128 = vrcp.f32 %v40_v22 }
  0xb0   :  { %v127_v23 = vpop.eup %126 }
  0xb1   :  { %v45_v24 = vmul.f32 %v127_v23, %v12_v0 }
  0xb3   :  { %v114_v25 = vadd.f32 -1.0, %v45_v24  ;;  %v57_v37 = vsel %vm55_vm5, %v45_v24, 0.0 }
  0xb4   :  { %v129_v26 = vpop.eup %128  ;;  %v59_v39 = vsel %vm18_vm0, %v57_v37, 0.0 }
  0xb5   :  { %v67_v27 = vmul.f32 1.442695, %v114_v25  ;;  %v46_v28 = vmul.f32 %v129_v26, %v13_v1 }
  0xb7   :  { %130 = vpow2.f32 %v67_v27  ;;  %v115_v29 = vadd.f32 -1.0, %v46_v28  ;;  %v58_v41 = vsel %vm56_vm6, %v46_v28, 0.0 }
  0xb8   :  { %v62_v42 = vsel %vm18_vm0, %v58_v41, 0.0 }
  0xb9   :  { %v69_v30 = vmul.f32 1.442695, %v115_v29 }
  0xbb   :  { %132 = vpow2.f32 %v69_v30 }
  0xc4   :  { %v131_v34 = vpop.eup %130 }
  0xc5   :  { %v71_v36 = vsel %vm18_vm0, %v131_v34, 0.0 }
  0xc6   :  { %72 = vadd.xlane.f32.xlu0 %v71_v36 }
  0xc8   :  { %v133_v38 = vpop.eup %132 }
  0xc9   :  { %v74_v40 = vsel %vm18_vm0, %v133_v38, 0.0 }
  0xca   :  { %60 = vadd.xlane.f32.xlu0 %v59_v39  ;;  %75 = vadd.xlane.f32.xlu1 %v74_v40 }
  0xce   :  { %63 = vadd.xlane.f32.xlu0 %v62_v42 }
 0x14f   :  { %v73_v43 = vpop.xlane.xlu0 %72 }
 0x150   :  { %134 = vlog2.f32 %v73_v43 }
 0x153   :  { %v76_v44 = vpop.xlane.xlu1 %75  ;;  %v61_v47 = vpop.xlane.xlu0 %60 }
 0x154   :  { %136 = vlog2.f32 %v76_v44 }
 0x157   :  { %v64_v53 = vpop.xlane.xlu0 %63 }
 0x15d   :  { %v135_v45 = vpop.eup %134 }
 0x15e   :  { %v78_v46 = vmul.f32 0.6931472, %v135_v45 }
 0x160   :  { %v81_v48 = vadd.f32 1.0, %v78_v46 }
 0x161   :  { %v137_v49 = vpop.eup %136 }
 0x162   :  { %v80_v50 = vmul.f32 0.6931472, %v137_v49  ;;  %v83_v51 = vsub.f32 %v81_v48, %v61_v47 }
 0x164   :  { %v82_v52 = vadd.f32 1.0, %v80_v50  ;;  %v86_v55 = vsel %vm85_vm7, %v83_v51, 0.0 }
 0x166   :  { %v84_v54 = vsub.f32 %v82_v52, %v64_v53 }
 0x168   :  { %v87_v56 = vsel %vm85_vm7, %v84_v54, 0.0 }
 0x169   :  { %v88_v57 = vadd.f32 %v87_v56, %v86_v55 }
 0x16b   :  { %89 = vadd.xlane.f32.xlu0 %v88_v57 }
 0x1f4   :  { %v90_v58 = vpop.xlane.xlu0 %89 }
 0x1f5   :  { %v91_v59 = vrot.slane %v90_v58, 4 }
 0x1f7   :  { %v92_v60 = vadd.f32 %v91_v59, %v90_v58 }
 0x1f9   :  { %v93_v61 = vrot.slane %v92_v60, 2 }
 0x1fb   :  { %v94_v62 = vadd.f32 %v93_v61, %v92_v60 }
 0x1fd   :  { %v95_v63 = vrot.slane %v94_v62, 1 }
 0x1ff   :  { %v96_v0 = vadd.f32 %v95_v63, %v94_v62 }
 0x201   :  { %116 = vpush %v96_v0 }
 0x232   :  { %s117_s17 = spop %116 }
 0x233   :  { %v98_v1 = vstv %s117_s17 }
 0x234   :  { %99 = vst [vmem:[#allocation2] sm:$0xff] %v98_v1 }
 0x235   :  { %149 = shalt.err (!%p146_p4)
}
 0x236   :  { %109 = dma.vmem_to_hbm [thread:$0]  %s107_s1, 128, %s200_s2, [#allocation3]  }
 0x237   :  { %158 = dma.done.wait [#allocation3], 128  }
 0x238   :  { %159 = vsyncadd [#allocation3], 4294967168 }
 0x239   :  { %113 = vsyncpa [#allocation3], 1 }

</bundles_post_ra>
